<compile_context>
chip_gen: v7x
topology: tpu7x:2x2x1
jax: 0.10.0
libtpu: 0.0.40
codegen_flags: <defaults>
</compile_context>

<pallas_src>
import functools

import jax
import jax.numpy as jnp
from jax.experimental import pallas as pl
from jax.experimental.pallas import tpu as pltpu


# Odd 32-bit mixing constants (written as signed int32 literals).
_SEED_MULT = -1640531535    # 0x9E3779B1  (golden-ratio odd constant)
_BATCH_MULT = -2048144789   # 0x85EBCA6B


def _mix32(x):
    """lowbias32-style avalanche mix; uint32 in / uint32 out."""
    x = x ^ (x >> 16)
    x = x * jnp.uint32(0x7FEB352D)
    x = x ^ (x >> 15)
    x = x * jnp.uint32(0x846CA68B)
    x = x ^ (x >> 16)
    return x


def _rnn_dropout_kernel(seed_ref, x_ref, o_ref, *, prob: float):
    """One grid step = one (1, TS, H) tile of one batch row."""
    b = pl.program_id(0)
    h = x_ref.shape[-1]
    keep_prob = 1.0 - prob

    # Per-(seed, batch) key.  NOTE: must NOT depend on the seq-tile index so
    # that every S-tile of batch row `b` sees the identical mask.
    key = (seed_ref[0] * jnp.int32(_SEED_MULT)
           + (b + jnp.int32(1)) * jnp.int32(_BATCH_MULT))        # int32, wraps

    # Per-hidden-lane counter -> hashed uniform 32-bit values (vector uint32).
    lane = jax.lax.broadcasted_iota(jnp.int32, (1, 1, h), dimension=2)
    bits = _mix32(_mix32((lane + key).astype(jnp.uint32)))

    # Exact integer threshold compare on the top 24 bits (values < 2^24, so
    # signed vs unsigned comparison is irrelevant).
    thresh = jnp.uint32(min(int(round(keep_prob * (1 << 24))), 1 << 24))
    keep = (bits >> 8) < thresh

    # (1, 1, H) mask, computed in f32, cast exactly once to the I/O dtype.
    mask = jnp.where(keep, jnp.float32(1.0 / keep_prob), jnp.float32(0.0))
    mask = mask.astype(o_ref.dtype)

    # Multiply in the native dtype; (1, TS, H) * (1, 1, H) broadcasts over seq.
    o_ref[...] = x_ref[...] * mask


def _choose_seq_tile(s: int, h: int, itemsize: int,
                     target_tile_bytes: int = 2 << 20) -> int:
    """Rows per seq tile: ~2 MiB per tile => ~8 MiB of pipeline buffers
    (2x double-buffered in+out), safely under the default scoped VMEM limit
    on v5e (16 MiB) / v6e / v7x (32 MiB)."""
    rows = target_tile_bytes // max(1, h * itemsize)
    ts = int(min(s, max(8, rows)))
    if ts < s:
        ts = max(8, (ts // 8) * 8)   # keep sublane alignment for partial tiles
    return ts


def rnn_dropout(x: jax.Array, seed: int, prob: float = 0.5,
                training: bool = True, *, seq_tile: int | None = None) -> jax.Array:
    """Pallas implementation of RNNDropout.forward for x of shape (B, S, H)."""
    if (not training) or prob == 0.0:
        return x
    if not (0.0 < prob < 1.0):
        raise ValueError(f"prob must lie in [0, 1) for dropout, got {prob}")

    B, S, H = x.shape
    ts = seq_tile if seq_tile is not None else _choose_seq_tile(S, H, x.dtype.itemsize)
    seed_arr = jnp.asarray([seed], dtype=jnp.int32)
    kernel = functools.partial(_rnn_dropout_kernel, prob=float(prob))

    return pl.pallas_call(
        kernel,
        out_shape=jax.ShapeDtypeStruct((B, S, H), x.dtype),
        grid_spec=pltpu.PrefetchScalarGridSpec(
            num_scalar_prefetch=1,                       # seed lands in SMEM
            grid=(B, pl.cdiv(S, ts)),
            in_specs=[pl.BlockSpec((1, ts, H), lambda b, s, seed: (b, s, 0))],
            out_specs=pl.BlockSpec((1, ts, H), lambda b, s, seed: (b, s, 0)),
        ),
        compiler_params=pltpu.CompilerParams(
            # Mask generation is stateless & deterministic per block, so the
            # batch axis is safely parallel (2 TensorCores on v7x).
            dimension_semantics=("parallel", "arbitrary"),
        ),
    )(seed_arr, x)


if __name__ == "__main__":
    key = jax.random.PRNGKey(0)
    B, S, H = 2, 8, 128          # small, lane-aligned hidden dim
    prob = 0.5

    x = jax.random.normal(key, (B, S, H), dtype=jnp.float32)

    out = rnn_dropout(x, seed=1234, prob=prob, training=True)
    out = jax.block_until_ready(out)

    # --- sanity checks mirroring the PyTorch semantics ---
    assert out.shape == x.shape and out.dtype == x.dtype

    # Mask must be constant along the sequence axis and in {0, 1/(1-p)}.
    ratio = out / jnp.where(x == 0, 1.0, x)          # (B, S, H)
    col_min = ratio.min(axis=1)
    col_max = ratio.max(axis=1)
    assert bool(jnp.allclose(col_min, col_max, atol=1e-5)), "mask varies along seq"
    scale = 1.0 / (1.0 - prob)
    assert bool(jnp.all(jnp.isclose(col_max, 0.0, atol=1e-5)
                        | jnp.isclose(col_max, scale, atol=1e-4))), \
        "mask values not in {0, 1/(1-p)}"

    # Dropout actually happened (guards against silently-disabled dropout).
    n_drop = int(jnp.sum(jnp.isclose(col_max, 0.0, atol=1e-5)))
    assert 0 < n_drop < B * H, "dropout degenerate (all kept or all dropped)"
    # Different batch rows get different masks.
    assert not bool(jnp.array_equal(col_max[0], col_max[1])), \
        "masks identical across batch rows"

    # Eval mode / prob=0 is identity.
    assert bool(jnp.array_equal(rnn_dropout(x, 0, prob, training=False), x))
    assert bool(jnp.array_equal(rnn_dropout(x, 0, 0.0, training=True), x))

    print("KERNEL_OK")
</pallas_src>

<mosaic_0001>
module attributes {stable_mosaic.version = 11 : i64} {
  func.func @_rnn_dropout_kernel(%arg0: i32, %arg1: i32, %arg2: memref<1xi32, #tpu.memory_space<smem>>, %arg3: memref<1x8x128xf32, #tpu.memory_space<vmem>>, %arg4: memref<1x8x128xf32, #tpu.memory_space<vmem>>) attributes {dimension_semantics = [#tpu.dimension_semantics<parallel>, #tpu.dimension_semantics<arbitrary>], iteration_bounds = array<i64: 2, 1>, scalar_prefetch = 1 : i64, scratch_operands = 0 : i64, tpu.core_type = #tpu.core_type<tc>, window_params = [{transform_indices = @transform_0, window_bounds = array<i64: 1, 8, 128>}, {transform_indices = @transform_1, window_bounds = array<i64: 1, 8, 128>}]} {
    %c0 = arith.constant 0 : index
    %0 = memref.load %arg2[%c0] : memref<1xi32, #tpu.memory_space<smem>>
    %c-1640531535_i32 = arith.constant -1640531535 : i32
    %1 = arith.muli %0, %c-1640531535_i32 : i32
    %c1_i32 = arith.constant 1 : i32
    %2 = arith.addi %arg0, %c1_i32 : i32
    %c-2048144789_i32 = arith.constant -2048144789 : i32
    %3 = arith.muli %2, %c-2048144789_i32 : i32
    %4 = arith.addi %1, %3 : i32
    %5 = tpu.iota {dimensions = array<i32: 2>} : vector<1x1x128xi32>
    %6 = vector.broadcast %4 : i32 to vector<1x1x128xi32>
    %7 = arith.addi %5, %6 : vector<1x1x128xi32>
    %c16_i32 = arith.constant 16 : i32
    %8 = vector.broadcast %c16_i32 : i32 to vector<1x1x128xi32>
    %9 = arith.shrui %7, %8 : vector<1x1x128xi32>
    %10 = arith.xori %7, %9 : vector<1x1x128xi32>
    %c2146121005_i32 = arith.constant 2146121005 : i32
    %11 = vector.broadcast %c2146121005_i32 : i32 to vector<1x1x128xi32>
    %12 = arith.muli %10, %11 : vector<1x1x128xi32>
    %c15_i32 = arith.constant 15 : i32
    %13 = vector.broadcast %c15_i32 : i32 to vector<1x1x128xi32>
    %14 = arith.shrui %12, %13 : vector<1x1x128xi32>
    %15 = arith.xori %12, %14 : vector<1x1x128xi32>
    %c-2073254261_i32 = arith.constant -2073254261 : i32
    %16 = vector.broadcast %c-2073254261_i32 : i32 to vector<1x1x128xi32>
    %17 = arith.muli %15, %16 : vector<1x1x128xi32>
    %c16_i32_0 = arith.constant 16 : i32
    %18 = vector.broadcast %c16_i32_0 : i32 to vector<1x1x128xi32>
    %19 = arith.shrui %17, %18 : vector<1x1x128xi32>
    %20 = arith.xori %17, %19 : vector<1x1x128xi32>
    %c16_i32_1 = arith.constant 16 : i32
    %21 = vector.broadcast %c16_i32_1 : i32 to vector<1x1x128xi32>
    %22 = arith.shrui %20, %21 : vector<1x1x128xi32>
    %23 = arith.xori %20, %22 : vector<1x1x128xi32>
    %c2146121005_i32_2 = arith.constant 2146121005 : i32
    %24 = vector.broadcast %c2146121005_i32_2 : i32 to vector<1x1x128xi32>
    %25 = arith.muli %23, %24 : vector<1x1x128xi32>
    %c15_i32_3 = arith.constant 15 : i32
    %26 = vector.broadcast %c15_i32_3 : i32 to vector<1x1x128xi32>
    %27 = arith.shrui %25, %26 : vector<1x1x128xi32>
    %28 = arith.xori %25, %27 : vector<1x1x128xi32>
    %c-2073254261_i32_4 = arith.constant -2073254261 : i32
    %29 = vector.broadcast %c-2073254261_i32_4 : i32 to vector<1x1x128xi32>
    %30 = arith.muli %28, %29 : vector<1x1x128xi32>
    %c16_i32_5 = arith.constant 16 : i32
    %31 = vector.broadcast %c16_i32_5 : i32 to vector<1x1x128xi32>
    %32 = arith.shrui %30, %31 : vector<1x1x128xi32>
    %33 = arith.xori %30, %32 : vector<1x1x128xi32>
    %c8_i32 = arith.constant 8 : i32
    %34 = vector.broadcast %c8_i32 : i32 to vector<1x1x128xi32>
    %35 = arith.shrui %33, %34 : vector<1x1x128xi32>
    %c8388608_i32 = arith.constant 8388608 : i32
    %36 = vector.broadcast %c8388608_i32 : i32 to vector<1x1x128xi32>
    %37 = arith.cmpi ult, %35, %36 : vector<1x1x128xi32>
    %cst = arith.constant 2.000000e+00 : f32
    %cst_6 = arith.constant 0.000000e+00 : f32
    %38 = vector.broadcast %cst : f32 to vector<1x1x128xf32>
    %39 = vector.broadcast %cst_6 : f32 to vector<1x1x128xf32>
    %40 = arith.select %37, %38, %39 : vector<1x1x128xi1>, vector<1x1x128xf32>
    %c0_7 = arith.constant 0 : index
    %c0_8 = arith.constant 0 : index
    %c0_9 = arith.constant 0 : index
    %41 = vector.load %arg3[%c0_7, %c0_8, %c0_9] : memref<1x8x128xf32, #tpu.memory_space<vmem>>, vector<1x8x128xf32>
    %42 = vector.broadcast %40 : vector<1x1x128xf32> to vector<1x8x128xf32>
    %43 = arith.mulf %41, %42 : vector<1x8x128xf32>
    %c0_10 = arith.constant 0 : index
    %c0_11 = arith.constant 0 : index
    %c0_12 = arith.constant 0 : index
    %44 = vector.load %arg4[%c0_10, %c0_11, %c0_12] : memref<1x8x128xf32, #tpu.memory_space<vmem>>, vector<1x8x128xf32>
    tpu.vector_store %arg4[%c0_10, %c0_11, %c0_12], %43 {strides = array<i32>} : memref<1x8x128xf32, #tpu.memory_space<vmem>>, vector<1x8x128xf32>,
    return
  }
  func.func @transform_0(%arg0: i32, %arg1: i32, %arg2: memref<1xi32, #tpu.memory_space<smem>>) -> (i32, i32, i32) {
    %c0_i32 = arith.constant 0 : i32
    %c0_i32_0 = arith.constant 0 : i32
    return %arg0, %arg1, %c0_i32 : i32, i32, i32
  }
  func.func @transform_1(%arg0: i32, %arg1: i32, %arg2: memref<1xi32, #tpu.memory_space<smem>>) -> (i32, i32, i32) {
    %c0_i32 = arith.constant 0 : i32
    %c0_i32_0 = arith.constant 0 : i32
    return %arg0, %arg1, %c0_i32 : i32, i32, i32
  }
}

</mosaic_0001>

<bundles_post_ra>
// kernel: tpu_custom_call.1
= control target key start
LH: loop header
LB: loop body
LE: loop exit
PB: predicated region body
PF: predicated region fallthrough
CT: control target
= control target key end

     0   :  { %s665_s0 = inlined_call_operand.<no memory space> [shape: s32[1], index: 0, kind: input, shape index: {}]   ;;  %s666_s1 = inlined_call_operand.hbm [shape: f32[2,8,128], index: 1, kind: input, shape index: {}]   ;;  %s667_s2 = inlined_call_operand.hbm [shape: f32[2,8,128], index: 2, kind: output, shape index: {}]  }
   0x1   :  { %7 = sst [smem:[#allocation3]] %s665_s0 }
   0x2   :  { %8 = vsyncpa [#allocation5], 0 }
   0x3   :  { %10 = vsyncpa [#allocation5 + $0x1], 0 }
   0x4   :  { %11 = vsyncpa [#allocation6], 0 }
   0x5   :  { %13 = vsyncpa [#allocation6 + $0x1], 0  ;;  %s488_s11 = smov 0   ;;  %s490_s12 = smov 0  }
   0x6   :  { %s492_s13 = smov 0   ;;  %s494_s14 = smov 0  }
   0x7   :  { %s496_s15 = smov 0   ;;  %s498_s16 = smov 0  }
   0x8 LB: > { %s277_s0 = sadd.s32 4294967295, %s465_s16   ;;  %s278_s17 = sadd.s32 4294967294, %s465_s16   ;;  %s465_s16 = sphi %s498_s16, %s19_s16   ;;  %s461_s15 = sphi %s496_s15, %s683_s15   ;;  %s457_s14 = sphi %s494_s14, %s682_s14   ;;  %s453_s13 = sphi %s492_s13, %s681_s13   ;;  %s449_s12 = sphi %s490_s12, %s680_s12   ;;  %s445_s11 = sphi %s488_s11, %s679_s11  }
   0x9   : > { %s31_s18 = sadd.s32 1, %s461_s15  ;;  %s40_s19 = sadd.s32 1, %s453_s13 }
   0xa   : > { %p33_p0 = scmp.ge.s32.totalorder %s31_s18, 2  ;;  %p47_p1 = scmp.ne.s32.totalorder %s453_s13, %s449_s12 }
   0xb   : > { %p48_p2 = scmp.eq.s32.totalorder %s465_s16, 0  ;;  %p53_p3 = scmp.ne.s32.totalorder %s449_s12, %s445_s11 }
   0xc   : > { %s685_s18 = smov (%p33_p0, %s31_s18), 0  ;;  %p54_p5 = scmp.eq.s32.totalorder %s277_s0, 0 }
   0xd   : > { %p529_p4 = por %p48_p2, %p47_p1  ;;  %s35_s21 = ssub.s32 %s461_s15, %s685_s18 }
   0xe   : > { %p79_p6 = scmp.eq.s32.totalorder %s277_s0, 1  ;;  %p38_p7 = scmp.eq.s32.totalorder %s35_s21, 0 }
   0xf   : > { %p535_p8 = por %p54_p5, %p53_p3  ;;  %p85_p10 = scmp.eq.s32.totalorder %s278_s17, 1 }
  0x10   : > { %p539_p9 = por %p79_p6, %p47_p1  ;;  %p302_p13 = scmp.lt.s32.totalorder %s465_s16, 2 }
  0x11   : > { %s544_s24 = scalar_select %p38_p7, %s453_s13, %s40_s19  }
  0x12   : > { %s671_s23 = scalar_select %p539_p9, 1, 0 }
  0x13   : > { %p546_p11 = por %p85_p10, %p53_p3  ;;  %s105_s26 = sand.u32 1, %s453_s13  }
  0x14   : > { %s281_s27 = sshll.u32 %s105_s26, 3  ;;  %s282_s28 = sshll.u32 %s461_s15, 7 }
  0x15   : > { %s672_s25 = scalar_select %p546_p11, 1, 0 }
  0x16   : > { %s557_s3 = scalar_lea.hbm %s666_s1, %s282_s28  ;;  %s109_s4 = scalar_lea.vmem [#allocation4], %s281_s27 }
  0x17   : > { %s117_s5 = sshll.u32 %s109_s4, 4  ;;  %p563_p0 = pnand %p302_p13, %p529_p4  ;;  %s559_s5 = int_to_ptr.vmem [resolvable:$true] %s117_s5 }
  0x18   : > { %s106_s7 = scalar_lea.sflag [#allocation5], %s105_s26  ;;  %s353_s8 = scalar_lea.hbm %s557_s3, 128 }
  0x19   : > { %p354_p3 = scmp.ne.s32.totalorder %s557_s3, %s353_s8  ;;  %p355_p5 = pneg %p563_p0 }
  0x1a   : > { %s358_s0 = scalar_lea.hbm %s666_s1, 256  ;;  %p359_p4 = scmp.lt.u32.totalorder %s557_s3, %s666_s1 }
  0x1b   : > { %p356_p6 = pnand %p355_p5, %p354_p3  ;;  %p360_p10 = scmp.lt.u32.totalorder %s358_s0, %s353_s8 }
  0x1c   : > { %p362_p12 = scmp.lt.u32.totalorder %s353_s8, %s557_s3 }
  0x1d   : > { %p357_p7 = pneg %p356_p6  ;;  %p361_p13 = por %p360_p10, %p359_p4 }
  0x1f   : > { %p363_p1 = por %p362_p12, %p361_p13 }
  0x21   : > { %p364_p2 = pnand %p363_p1, %p357_p7 }
  0x23   : > { %367 = shalt.err (!%p364_p2)
}
  0x24   : > { %s368_s20 = scalar_lea.vmem %s559_s5, 128  ;;  %s467_s21 = smov [#allocation4]  }
  0x25   : > { %p369_p3 = scmp.ne.s32.totalorder %s559_s5, %s368_s20  ;;  %s373_s26 = sshll.u32 %s467_s21, 4  ;;  %s374_s26 = int_to_ptr.vmem [resolvable:$false] %s373_s26 }
  0x26   : > { %s375_s27 = scalar_lea.vmem %s374_s26, 256  ;;  %p376_p9 = scmp.lt.s32.totalorder %s559_s5, %s374_s26 }
  0x27   : > { %p371_p6 = pnand %p369_p3, %p355_p5  ;;  %p377_p4 = scmp.lt.s32.totalorder %s375_s27, %s368_s20 }
  0x29   : > { %p372_p11 = pneg %p371_p6  ;;  %p378_p10 = por %p377_p4, %p376_p9 }
  0x2b   : > { %p379_p12 = pnand %p378_p10, %p372_p11 }
  0x2d   : > { %382 = shalt.err (!%p379_p12)
}
  0x2e   : > { %297 = dma.hbm_to_vmem [thread:$0]  (!%p563_p0), %s557_s3, 128, %s559_s5, %s106_s7  }
  0x2f   : > { %p674_p1 = scmp.lt.s32.totalorder %s465_s16, 3  ;;  %p675_p2 = scmp.ge.s32.totalorder %s465_s16, 1 }
  0x31   : > { %p123_p5 = pnand %p675_p2, %p674_p1 }
  0x32   : > { %s599_s28 = sand.u32 (!%p123_p5), 1, %s449_s12  }
  0x33   : > { %126 = sbr.rel (%p123_p5) target bundleno = 123 (0x7b), region = 24  ;;  %s284_s29 = sshll.u32 (!%p123_p5), %s599_s28, 3 }
  0x34   : > { %s129_s30 = scalar_lea.sflag (!%p123_p5), [#allocation5], %s599_s28  ;;  %s132_s4 = scalar_lea.vmem (!%p123_p5), [#allocation4], %s284_s29 }
  0x3a   : > { %436 = dma.done.wait (%p535_p8), %s129_s30, 128  }
  0x3b   : > { %438 = vsyncadd (%p535_p8), %s129_s30, 4294967168  ;;  %s151_s3 = sld [smem:[#allocation3]]  ;;  %s153_s5 = sadd.s32 1, %s457_s14  ;;  %v156_v0 = vlaneseq  ;;  %v179_v21 = vld [vmem:[%s132_s4] sm:$0xff]  ;;  %v468_v22 = vmov 0.0  }
  0x3c   : > { %s154_s6 = smul.u32 2246822507, %s153_s5  ;;  %s150_s22 = scalar_lea.vmem [#allocation7], %s284_s29 }
  0x3d   : > { %v157_v1 = vand.u32 127, %v156_v0  ;;  %s197_s9 = sshll.u32 %s150_s22, 4  ;;  %s287_s10 = sshll.u32 %s457_s14, 7  ;;  %s613_s9 = int_to_ptr.vmem [resolvable:$true] %s197_s9 }
  0x3e   : > { %s618_s19 = scalar_lea.hbm %s667_s2, %s287_s10  ;;  %s183_s20 = scalar_lea.sflag [#allocation6], %s599_s28 }
  0x3f   : > { %s383_s21 = scalar_lea.vmem %s613_s9, 128  ;;  %p676_p9 = scmp.ne.s32.totalorder %s671_s23, 0 }
  0x40   : > { %p384_p8 = scmp.ne.s32.totalorder %s613_s9, %s383_s21  ;;  %s469_s14 = smov [#allocation7]  }
  0x41   : > { %s152_s7 = smul.u32 2654435761, %s151_s3  ;;  %s387_s26 = sshll.u32 %s469_s14, 4  ;;  %s388_s26 = int_to_ptr.vmem [resolvable:$false] %s387_s26 }
  0x42   : > { %p385_p11 = pnand %p384_p8, %p676_p9  ;;  %s389_s27 = scalar_lea.vmem %s388_s26, 256 }
  0x43   : > { %s155_s8 = sadd.s32 %s154_s6, %s152_s7  ;;  %p390_p7 = scmp.lt.s32.totalorder %s613_s9, %s388_s26 }
  0x44   : > { %v158_v2 = vstv %s155_s8  ;;  %p386_p0 = pneg %p385_p11  ;;  %p391_p13 = scmp.lt.s32.totalorder %s389_s27, %s383_s21 }
  0x45   : > { %v159_v3 = vadd.s32 %v158_v2, %v157_v1 }
  0x46   : > { %p392_p3 = por %p391_p13, %p390_p7 }
  0x47   : > { %v160_v4 = vshrl.u32 %v159_v3, 16 }
  0x48   : > { %p393_p6 = pnand %p392_p3, %p386_p0 }
  0x49   : > { %v161_v5 = vxor.u32 %v160_v4, %v159_v3 }
  0x4b   : > { %v162_v6 = vmul.u32 2146121005, %v161_v5 }
  0x4d   : > { %v163_v7 = vshrl.u32 %v162_v6, 15 }
  0x4f   : > { %v164_v8 = vxor.u32 %v163_v7, %v162_v6 }
  0x51   : > { %v165_v9 = vmul.u32 2221713035, %v164_v8 }
  0x53   : > { %v166_v10 = vshrl.u32 %v165_v9, 16 }
  0x55   : > { %v167_v11 = vxor.u32 %v166_v10, %v165_v9 }
  0x57   : > { %v168_v12 = vshrl.u32 %v167_v11, 16 }
  0x59   : > { %v169_v13 = vxor.u32 %v168_v12, %v167_v11 }
  0x5b   : > { %v170_v14 = vmul.u32 2146121005, %v169_v13 }
  0x5d   : > { %v171_v15 = vshrl.u32 %v170_v14, 15 }
  0x5f   : > { %v172_v16 = vxor.u32 %v171_v15, %v170_v14 }
  0x61   : > { %v173_v17 = vmul.u32 2221713035, %v172_v16 }
  0x63   : > { %v174_v18 = vshrl.u32 %v173_v17, 16 }
  0x65   : > { %v175_v19 = vxor.u32 %v174_v18, %v173_v17 }
  0x67   : > { %v176_v20 = vshrl.u32 %v175_v19, 8 }
  0x69   : > { %vm177_vm0 = vcmp.lt.u32.totalorder %v176_v20, 8388608 }
  0x6a   : > { %v178_v23 = vsel %vm177_vm0, 2.0, %v468_v22 }
  0x6b   : > { %v180_v24 = vmul.f32 %v179_v21, %v178_v23 }
  0x6d   : > { %181 = vst [vmem:[%s150_s22] sm:$0xff] %v180_v24 }
  0x6e   : > { %396 = shalt.err (!%p393_p6)
}
  0x6f   : > { %s397_s28 = scalar_lea.hbm %s618_s19, 128  ;;  %s401_s4 = scalar_lea.hbm %s667_s2, 256 }
  0x70   : > { %p398_p4 = scmp.ne.s32.totalorder %s618_s19, %s397_s28  ;;  %p402_p1 = scmp.lt.u32.totalorder %s618_s19, %s667_s2 }
  0x71   : > { %p403_p2 = scmp.lt.u32.totalorder %s401_s4, %s397_s28  ;;  %p405_p8 = scmp.lt.u32.totalorder %s397_s28, %s618_s19 }
  0x72   : > { %p399_p10 = pnand %p398_p4, %p676_p9 }
  0x73   : > { %p404_p5 = por %p403_p2, %p402_p1 }
  0x74   : > { %p400_p12 = pneg %p399_p10 }
  0x75   : > { %p406_p11 = por %p405_p8, %p404_p5 }
  0x77   : > { %p407_p0 = pnand %p406_p11, %p400_p12 }
  0x79   : > { %410 = shalt.err (!%p407_p0)
}
  0x7a   : > { %292 = dma.vmem_to_hbm [thread:$0]  (%p676_p9), %s613_s9, 128, %s618_s19, %s183_s20  }
  0x7b PF: > { %s209_s6 = sand.u32 1, %s445_s11   ;;  %p677_p7 = scmp.ne.s32.totalorder %s672_s25, 0 }
  0x7c   : > { %p678_p13 = scmp.ge.s32.totalorder %s465_s16, 2  ;;  %s210_s7 = scalar_lea.sflag [#allocation6], %s209_s6 }
  0x7e   : > { %p299_p3 = pnand %p678_p13, %p677_p7 }
  0x80   : > { %440 = dma.done.wait (!%p299_p3), %s210_s7, 128  }
  0x81   : > { %442 = vsyncadd (!%p299_p3), %s210_s7, 4294967168  ;;  %s19_s16 = sadd.s32 1, %s465_s16   ;;  %s679_s11 = smov %s449_s12 }
  0x82   : > { %p16_p6 = scmp.ge.s32.totalorder %s19_s16, 4   ;;  %s680_s12 = smov %s453_s13 }
  0x83   : > { %s681_s13 = smov %s544_s24  ;;  %s682_s14 = smov %s461_s15 }
  0x84   : > { %s683_s15 = smov %s685_s18  ;;  %18 = sbr.rel (!%p16_p6) target bundleno = 8 (0x8), region = 69 }
  0x8b   :  { %215 = vsyncpa [#allocation5], 1 }
  0x8c   :  { %217 = vsyncpa [#allocation5 + $0x1], 1 }
  0x8d   :  { %218 = vsyncpa [#allocation6], 1 }
  0x8e   :  { %220 = vsyncpa [#allocation6 + $0x1], 1 }

</bundles_post_ra>
